<compile_context>
chip_gen: v6e
topology: v6e:2x2x1
jax: 0.10.0
libtpu: 0.0.40
codegen_flags: <defaults>
</compile_context>

<pallas_src>
import functools

import jax
import jax.numpy as jnp
from jax.experimental import pallas as pl
from jax.experimental.pallas import tpu as pltpu

SMOOTH_NR = 1e-6
SMOOTH_DR = 1e-6

_LANE = 128
_SUBLANE = 8


def _cdiv(a, b):
    return (a + b - 1) // b


def _round_up(x, m):
    return ((x + m - 1) // m) * m


def _dice_partial_kernel(x_ref, t_ref, inter_ref, denom_ref, *,
                         tile_s, tiles_per_split, s_total):
    """Grid point (c, i, j): spatial split c, row block i, spatial tile j.

    x_ref, t_ref         : (tn, tile_s) VMEM tiles of logits / targets.
    inter_ref, denom_ref : (tn, 1) f32 output blocks, resident across j
                           (same block index for all j => accumulators).
    """
    c = pl.program_id(0)
    j = pl.program_id(2)

    @pl.when(j == 0)
    def _init():
        inter_ref[...] = jnp.zeros_like(inter_ref)
        denom_ref[...] = jnp.zeros_like(denom_ref)

    x = x_ref[...].astype(jnp.float32)
    t = t_ref[...].astype(jnp.float32)
    p = jax.nn.sigmoid(x)  # EUP transcendental; f32 accumulation below

    # Logical start of this tile along the (unpadded) spatial axis.  The input
    # index_map clamps the DMA into bounds; here we use the *unclamped* start,
    # so the ragged tail and any phantom tile from the split are masked exactly.
    start = (c * tiles_per_split + j) * tile_s

    @pl.when(start + tile_s <= s_total)
    def _interior():  # hot path: fully in-bounds tile, no masking
        inter_ref[...] += jnp.sum(p * t, axis=-1, keepdims=True)
        denom_ref[...] += jnp.sum(p + t, axis=-1, keepdims=True)

    @pl.when(start + tile_s > s_total)
    def _boundary():  # ragged tail / phantom tile: mask invalid lanes
        col = jax.lax.broadcasted_iota(jnp.int32, p.shape, 1)
        valid = (col + start) < s_total
        inter_ref[...] += jnp.sum(jnp.where(valid, p * t, 0.0),
                                  axis=-1, keepdims=True)
        denom_ref[...] += jnp.sum(jnp.where(valid, p + t, 0.0),
                                  axis=-1, keepdims=True)


def _vmem_plan(S, tn, num_row_blocks, x_isz, t_isz, block_bytes):
    """Pick (tile_s, num_real_tiles, n_split, tiles_per_split, vmem_limit)."""
    try:
        vmem_cap = int(pltpu.get_tpu_info().vmem_capacity_bytes)
    except Exception:  # conservative fallback if the query is unavailable
        vmem_cap = 64 * 1024 * 1024
    if block_bytes is None:
        # ~4 MiB logits block on 64 MiB-VMEM parts (v7x), ~8 MiB otherwise.
        block_bytes = (4 if vmem_cap <= 64 * 1024 * 1024 else 8) * 1024 * 1024
    budget = vmem_cap * 7 // 8

    # Size tiles by element count (f32-equivalent) so narrower inputs simply
    # use less VMEM rather than blowing up the temporaries.
    tile_elems = max(_LANE, block_bytes // 4)
    tile_s_max = max(_LANE, (tile_elems // max(tn, 1)) // _LANE * _LANE)

    while True:
        nt0 = _cdiv(S, tile_s_max)
        # Split the spatial tiles across TensorCores (v7x megacore) when the
        # row axis alone cannot feed both cores.  Inert on v5e/v6e.
        n_split = 2 if (nt0 >= 2 and num_row_blocks < 2) else 1
        nt = _round_up(nt0, n_split)
        if nt <= 1:
            tile_s = S  # single tile; block dim == full array dim is legal
        else:
            tile_s = min(_round_up(_cdiv(S, nt), _LANE), tile_s_max)
        num_real_tiles = _cdiv(S, tile_s)
        tiles_per_split = nt // n_split

        # double-buffered input blocks + ~6 full-tile f32 temporaries + slack.
        est = (2 * tn * tile_s * (x_isz + t_isz)
               + 6 * tn * tile_s * 4
               + 4 * 1024 * 1024)
        if est <= budget or tile_s_max <= _LANE:
            break
        tile_s_max = max(_LANE, (tile_s_max // 2) // _LANE * _LANE)

    vmem_limit = int(min(max(est, 32 * 1024 * 1024), budget))
    return tile_s, num_real_tiles, n_split, tiles_per_split, vmem_limit


@functools.partial(jax.jit, static_argnames=("block_bytes",))
def dice_loss_3d(inputs, targets, block_bytes=None):
    """inputs, targets: (B, C, D, H, W) arrays (logits / binary targets)."""
    B, C = inputs.shape[:2]
    N = B * C
    S = 1
    for d in inputs.shape[2:]:
        S *= d

    # Free row-major reshape; no dtype casts, no padding copies in the wrapper.
    x2d = inputs.reshape(N, S)
    t2d = targets.reshape(N, S)

    tn = N if N < _SUBLANE else _SUBLANE
    num_row_blocks = _cdiv(N, tn)

    tile_s, num_tiles, n_split, tiles_per_split, vmem_limit = _vmem_plan(
        S, tn, num_row_blocks,
        jnp.dtype(x2d.dtype).itemsize, jnp.dtype(t2d.dtype).itemsize,
        block_bytes)

    last_tile = num_tiles - 1

    def _in_index(c, i, j):
        # Clamp so phantom tiles (tile count rounded up to a multiple of
        # n_split) stay in bounds; they are fully masked inside the kernel.
        jj = jnp.minimum(c * tiles_per_split + j, last_tile)
        return (i, jj)

    acc_spec = pl.BlockSpec((None, tn, 1), lambda c, i, j: (c, i, 0))
    acc_shape = jax.ShapeDtypeStruct((n_split, N, 1), jnp.float32)

    kernel = functools.partial(
        _dice_partial_kernel,
        tile_s=tile_s, tiles_per_split=tiles_per_split, s_total=S)

    inter_p, denom_p = pl.pallas_call(
        kernel,
        out_shape=(acc_shape, acc_shape),
        grid_spec=pltpu.PrefetchScalarGridSpec(
            num_scalar_prefetch=0,
            grid=(n_split, num_row_blocks, tiles_per_split),
            in_specs=[
                pl.BlockSpec((tn, tile_s), _in_index),
                pl.BlockSpec((tn, tile_s), _in_index),
            ],
            out_specs=(acc_spec, acc_spec),
        ),
        compiler_params=pltpu.CompilerParams(
            dimension_semantics=("parallel", "parallel", "arbitrary"),
            vmem_limit_bytes=vmem_limit,
        ),
    )(x2d, t2d)

    # MONAI dice (batch=False): per-(batch, channel) dice, then mean.
    inter = jnp.sum(inter_p, axis=0)[:, 0]   # (N,)
    denom = jnp.sum(denom_p, axis=0)[:, 0]   # (N,)
    dice = 1.0 - (2.0 * inter + SMOOTH_NR) / (denom + SMOOTH_DR)
    return jnp.mean(dice)


def _reference(inputs, targets):
    p = jax.nn.sigmoid(inputs.astype(jnp.float32))
    t = targets.astype(jnp.float32)
    axes = (2, 3, 4)
    inter = jnp.sum(p * t, axis=axes)
    denom = jnp.sum(p, axis=axes) + jnp.sum(t, axis=axes)
    f = 1.0 - (2.0 * inter + SMOOTH_NR) / (denom + SMOOTH_DR)
    return jnp.mean(f)


def _check(shape, keys, block_bytes=None):
    k1, k2 = keys
    inputs = jax.random.normal(k1, shape, dtype=jnp.float32)
    targets = jax.random.bernoulli(k2, 0.3, shape).astype(jnp.float32)
    loss = jax.block_until_ready(dice_loss_3d(inputs, targets,
                                              block_bytes=block_bytes))
    ref = jax.block_until_ready(_reference(inputs, targets))
    assert jnp.allclose(loss, ref, atol=1e-5, rtol=1e-5), (shape, loss, ref)


if __name__ == "__main__":
    key = jax.random.PRNGKey(0)
    keys = jax.random.split(key, 8)

    # Case 1: tile-aligned shapes, single tile, single split.
    _check((2, 4, 8, 16, 16), (keys[0], keys[1]))

    # Case 2: small ragged shapes (N=6 < 8 rows, S=105 not a lane multiple).
    _check((2, 3, 3, 5, 7), (keys[2], keys[3]))

    # Case 3: forced tiny tiles -> multi-tile + megacore spatial split +
    # masked ragged tail + one phantom (clamped) tile.
    _check((1, 1, 4, 25, 11), (keys[4], keys[5]), block_bytes=2048)

    # Case 4: N=10 (partial last row block, masked output writeback).
    _check((2, 5, 4, 16, 16), (keys[6], keys[7]))

    print("KERNEL_OK")
</pallas_src>

<mosaic_0001>
module attributes {stable_mosaic.version = 11 : i64} {
  func.func @_dice_partial_kernel(%arg0: i32, %arg1: i32, %arg2: i32, %arg3: memref<8x2048xf32, #tpu.memory_space<vmem>>, %arg4: memref<8x2048xf32, #tpu.memory_space<vmem>>, %arg5: memref<1x8x1xf32, #tpu.memory_space<vmem>>, %arg6: memref<1x8x1xf32, #tpu.memory_space<vmem>>) attributes {dimension_semantics = [#tpu.dimension_semantics<parallel>, #tpu.dimension_semantics<parallel>, #tpu.dimension_semantics<arbitrary>], iteration_bounds = array<i64: 1, 1, 1>, scalar_prefetch = 0 : i64, scratch_operands = 0 : i64, tpu.core_type = #tpu.core_type<tc>, window_params = [{transform_indices = @transform_0, window_bounds = array<i64: 8, 2048>}, {transform_indices = @transform_1, window_bounds = array<i64: 8, 2048>}, {transform_indices = @transform_2, window_bounds = array<i64: 1, 8, 1>}, {transform_indices = @transform_3, window_bounds = array<i64: 1, 8, 1>}]} {
    %c0_i32 = arith.constant 0 : i32
    %0 = arith.cmpi eq, %arg2, %c0_i32 : i32
    %1 = arith.extui %0 : i1 to i32
    %c0_i32_0 = arith.constant 0 : i32
    %2 = arith.cmpi ne, %1, %c0_i32_0 : i32
    scf.if %2 {
      %cst_10 = arith.constant 0.000000e+00 : f32
      %21 = vector.broadcast %cst_10 : f32 to vector<8x1xf32>
      %c0_11 = arith.constant 0 : index
      %c0_12 = arith.constant 0 : index
      %c0_13 = arith.constant 0 : index
      %22 = vector.load %arg5[%c0_11, %c0_12, %c0_13] : memref<1x8x1xf32, #tpu.memory_space<vmem>>, vector<1x8x1xf32>
      %23 = vector.shape_cast %22 : vector<1x8x1xf32> to vector<8x1xf32>
      %24 = vector.shape_cast %21 : vector<8x1xf32> to vector<1x8x1xf32>
      tpu.vector_store %arg5[%c0_11, %c0_12, %c0_13], %24 {strides = array<i32>} : memref<1x8x1xf32, #tpu.memory_space<vmem>>, vector<1x8x1xf32>,
      %cst_14 = arith.constant 0.000000e+00 : f32
      %25 = vector.broadcast %cst_14 : f32 to vector<8x1xf32>
      %c0_15 = arith.constant 0 : index
      %c0_16 = arith.constant 0 : index
      %c0_17 = arith.constant 0 : index
      %26 = vector.load %arg6[%c0_15, %c0_16, %c0_17] : memref<1x8x1xf32, #tpu.memory_space<vmem>>, vector<1x8x1xf32>
      %27 = vector.shape_cast %26 : vector<1x8x1xf32> to vector<8x1xf32>
      %28 = vector.shape_cast %25 : vector<8x1xf32> to vector<1x8x1xf32>
      tpu.vector_store %arg6[%c0_15, %c0_16, %c0_17], %28 {strides = array<i32>} : memref<1x8x1xf32, #tpu.memory_space<vmem>>, vector<1x8x1xf32>,
    } else {
    }
    %c0 = arith.constant 0 : index
    %c0_1 = arith.constant 0 : index
    %3 = vector.load %arg3[%c0, %c0_1] : memref<8x2048xf32, #tpu.memory_space<vmem>>, vector<8x2048xf32>
    %c0_2 = arith.constant 0 : index
    %c0_3 = arith.constant 0 : index
    %4 = vector.load %arg4[%c0_2, %c0_3] : memref<8x2048xf32, #tpu.memory_space<vmem>>, vector<8x2048xf32>
    %5 = arith.negf %3 : vector<8x2048xf32>
    %6 = math.exp %5 : vector<8x2048xf32>
    %cst = arith.constant 1.000000e+00 : f32
    %7 = vector.broadcast %cst : f32 to vector<8x2048xf32>
    %8 = arith.addf %7, %6 : vector<8x2048xf32>
    %9 = arith.divf %7, %8 : vector<8x2048xf32>
    %c1_i32 = arith.constant 1 : i32
    %10 = arith.muli %arg0, %c1_i32 : i32
    %11 = arith.addi %10, %arg2 : i32
    %c2048_i32 = arith.constant 2048 : i32
    %12 = arith.muli %11, %c2048_i32 : i32
    %c2048_i32_4 = arith.constant 2048 : i32
    %13 = arith.addi %12, %c2048_i32_4 : i32
    %c2048_i32_5 = arith.constant 2048 : i32
    %14 = arith.cmpi sle, %13, %c2048_i32_5 : i32
    %15 = arith.extui %14 : i1 to i32
    %c0_i32_6 = arith.constant 0 : i32
    %16 = arith.cmpi ne, %15, %c0_i32_6 : i32
    scf.if %16 {
      %c0_10 = arith.constant 0 : index
      %c0_11 = arith.constant 0 : index
      %c0_12 = arith.constant 0 : index
      %21 = vector.load %arg5[%c0_10, %c0_11, %c0_12] : memref<1x8x1xf32, #tpu.memory_space<vmem>>, vector<1x8x1xf32>
      %22 = vector.shape_cast %21 : vector<1x8x1xf32> to vector<8x1xf32>
      %23 = arith.mulf %9, %4 : vector<8x2048xf32>
      %cst_13 = arith.constant dense<0.000000e+00> : vector<8xf32>
      %24 = vector.multi_reduction <add>, %23, %cst_13 [1] : vector<8x2048xf32> to vector<8xf32>
      %25 = vector.shape_cast %24 : vector<8xf32> to vector<8x1xf32>
      %26 = arith.addf %22, %25 : vector<8x1xf32>
      %c0_14 = arith.constant 0 : index
      %c0_15 = arith.constant 0 : index
      %c0_16 = arith.constant 0 : index
      %27 = vector.load %arg5[%c0_14, %c0_15, %c0_16] : memref<1x8x1xf32, #tpu.memory_space<vmem>>, vector<1x8x1xf32>
      %28 = vector.shape_cast %27 : vector<1x8x1xf32> to vector<8x1xf32>
      %29 = vector.shape_cast %26 : vector<8x1xf32> to vector<1x8x1xf32>
      tpu.vector_store %arg5[%c0_14, %c0_15, %c0_16], %29 {strides = array<i32>} : memref<1x8x1xf32, #tpu.memory_space<vmem>>, vector<1x8x1xf32>,
      %c0_17 = arith.constant 0 : index
      %c0_18 = arith.constant 0 : index
      %c0_19 = arith.constant 0 : index
      %30 = vector.load %arg6[%c0_17, %c0_18, %c0_19] : memref<1x8x1xf32, #tpu.memory_space<vmem>>, vector<1x8x1xf32>
      %31 = vector.shape_cast %30 : vector<1x8x1xf32> to vector<8x1xf32>
      %32 = arith.addf %9, %4 : vector<8x2048xf32>
      %cst_20 = arith.constant dense<0.000000e+00> : vector<8xf32>
      %33 = vector.multi_reduction <add>, %32, %cst_20 [1] : vector<8x2048xf32> to vector<8xf32>
      %34 = vector.shape_cast %33 : vector<8xf32> to vector<8x1xf32>
      %35 = arith.addf %31, %34 : vector<8x1xf32>
      %c0_21 = arith.constant 0 : index
      %c0_22 = arith.constant 0 : index
      %c0_23 = arith.constant 0 : index
      %36 = vector.load %arg6[%c0_21, %c0_22, %c0_23] : memref<1x8x1xf32, #tpu.memory_space<vmem>>, vector<1x8x1xf32>
      %37 = vector.shape_cast %36 : vector<1x8x1xf32> to vector<8x1xf32>
      %38 = vector.shape_cast %35 : vector<8x1xf32> to vector<1x8x1xf32>
      tpu.vector_store %arg6[%c0_21, %c0_22, %c0_23], %38 {strides = array<i32>} : memref<1x8x1xf32, #tpu.memory_space<vmem>>, vector<1x8x1xf32>,
    } else {
    }
    %c2048_i32_7 = arith.constant 2048 : i32
    %17 = arith.addi %12, %c2048_i32_7 : i32
    %c2048_i32_8 = arith.constant 2048 : i32
    %18 = arith.cmpi sgt, %17, %c2048_i32_8 : i32
    %19 = arith.extui %18 : i1 to i32
    %c0_i32_9 = arith.constant 0 : i32
    %20 = arith.cmpi ne, %19, %c0_i32_9 : i32
    scf.if %20 {
      %21 = tpu.iota {dimensions = array<i32: 1>} : vector<8x2048xi32>
      %22 = vector.broadcast %12 : i32 to vector<8x2048xi32>
      %23 = arith.addi %21, %22 : vector<8x2048xi32>
      %c2048_i32_10 = arith.constant 2048 : i32
      %24 = vector.broadcast %c2048_i32_10 : i32 to vector<8x2048xi32>
      %25 = arith.cmpi slt, %23, %24 : vector<8x2048xi32>
      %c0_11 = arith.constant 0 : index
      %c0_12 = arith.constant 0 : index
      %c0_13 = arith.constant 0 : index
      %26 = vector.load %arg5[%c0_11, %c0_12, %c0_13] : memref<1x8x1xf32, #tpu.memory_space<vmem>>, vector<1x8x1xf32>
      %27 = vector.shape_cast %26 : vector<1x8x1xf32> to vector<8x1xf32>
      %28 = arith.mulf %9, %4 : vector<8x2048xf32>
      %cst_14 = arith.constant 0.000000e+00 : f32
      %29 = vector.broadcast %cst_14 : f32 to vector<8x2048xf32>
      %30 = arith.select %25, %28, %29 : vector<8x2048xi1>, vector<8x2048xf32>
      %cst_15 = arith.constant dense<0.000000e+00> : vector<8xf32>
      %31 = vector.multi_reduction <add>, %30, %cst_15 [1] : vector<8x2048xf32> to vector<8xf32>
      %32 = vector.shape_cast %31 : vector<8xf32> to vector<8x1xf32>
      %33 = arith.addf %27, %32 : vector<8x1xf32>
      %c0_16 = arith.constant 0 : index
      %c0_17 = arith.constant 0 : index
      %c0_18 = arith.constant 0 : index
      %34 = vector.load %arg5[%c0_16, %c0_17, %c0_18] : memref<1x8x1xf32, #tpu.memory_space<vmem>>, vector<1x8x1xf32>
      %35 = vector.shape_cast %34 : vector<1x8x1xf32> to vector<8x1xf32>
      %36 = vector.shape_cast %33 : vector<8x1xf32> to vector<1x8x1xf32>
      tpu.vector_store %arg5[%c0_16, %c0_17, %c0_18], %36 {strides = array<i32>} : memref<1x8x1xf32, #tpu.memory_space<vmem>>, vector<1x8x1xf32>,
      %c0_19 = arith.constant 0 : index
      %c0_20 = arith.constant 0 : index
      %c0_21 = arith.constant 0 : index
      %37 = vector.load %arg6[%c0_19, %c0_20, %c0_21] : memref<1x8x1xf32, #tpu.memory_space<vmem>>, vector<1x8x1xf32>
      %38 = vector.shape_cast %37 : vector<1x8x1xf32> to vector<8x1xf32>
      %39 = arith.addf %9, %4 : vector<8x2048xf32>
      %cst_22 = arith.constant 0.000000e+00 : f32
      %40 = vector.broadcast %cst_22 : f32 to vector<8x2048xf32>
      %41 = arith.select %25, %39, %40 : vector<8x2048xi1>, vector<8x2048xf32>
      %cst_23 = arith.constant dense<0.000000e+00> : vector<8xf32>
      %42 = vector.multi_reduction <add>, %41, %cst_23 [1] : vector<8x2048xf32> to vector<8xf32>
      %43 = vector.shape_cast %42 : vector<8xf32> to vector<8x1xf32>
      %44 = arith.addf %38, %43 : vector<8x1xf32>
      %c0_24 = arith.constant 0 : index
      %c0_25 = arith.constant 0 : index
      %c0_26 = arith.constant 0 : index
      %45 = vector.load %arg6[%c0_24, %c0_25, %c0_26] : memref<1x8x1xf32, #tpu.memory_space<vmem>>, vector<1x8x1xf32>
      %46 = vector.shape_cast %45 : vector<1x8x1xf32> to vector<8x1xf32>
      %47 = vector.shape_cast %44 : vector<8x1xf32> to vector<1x8x1xf32>
      tpu.vector_store %arg6[%c0_24, %c0_25, %c0_26], %47 {strides = array<i32>} : memref<1x8x1xf32, #tpu.memory_space<vmem>>, vector<1x8x1xf32>,
    } else {
    }
    return
  }
  func.func @transform_0(%arg0: i32, %arg1: i32, %arg2: i32) -> (i32, i32) {
    %c1_i32 = arith.constant 1 : i32
    %0 = arith.muli %arg0, %c1_i32 : i32
    %1 = arith.addi %0, %arg2 : i32
    %c0_i32 = arith.constant 0 : i32
    %2 = arith.minsi %1, %c0_i32 : i32
    %c0_i32_0 = arith.constant 0 : i32
    return %arg1, %2 : i32, i32
  }
  func.func @transform_1(%arg0: i32, %arg1: i32, %arg2: i32) -> (i32, i32) {
    %c1_i32 = arith.constant 1 : i32
    %0 = arith.muli %arg0, %c1_i32 : i32
    %1 = arith.addi %0, %arg2 : i32
    %c0_i32 = arith.constant 0 : i32
    %2 = arith.minsi %1, %c0_i32 : i32
    %c0_i32_0 = arith.constant 0 : i32
    return %arg1, %2 : i32, i32
  }
  func.func @transform_2(%arg0: i32, %arg1: i32, %arg2: i32) -> (i32, i32, i32) {
    %c0_i32 = arith.constant 0 : i32
    %c0_i32_0 = arith.constant 0 : i32
    return %arg0, %arg1, %c0_i32 : i32, i32, i32
  }
  func.func @transform_3(%arg0: i32, %arg1: i32, %arg2: i32) -> (i32, i32, i32) {
    %c0_i32 = arith.constant 0 : i32
    %c0_i32_0 = arith.constant 0 : i32
    return %arg0, %arg1, %c0_i32 : i32, i32, i32
  }
}

</mosaic_0001>

<bundles_post_ra>
// kernel: dice_loss_3d.1
= control target key start
LH: loop header
LB: loop body
LE: loop exit
PB: predicated region body
PF: predicated region fallthrough
CT: control target
= control target key end

     0   :  { %vm81_vm0 = vcmask 7168   ;;  %v552_v3 = vmov 0.0   ;;  %s693_s0 = inlined_call_operand.vmem [shape: f32[8,2048], index: 0, kind: input, shape index: {}]   ;;  %s694_s2 = inlined_call_operand.vmem [shape: f32[1,8,1], index: 2, kind: output, shape index: {0}]   ;;  %s695_s1 = inlined_call_operand.vmem [shape: f32[8,2048], index: 1, kind: input, shape index: {}]   ;;  %s696_s3 = inlined_call_operand.vmem [shape: f32[1,8,1], index: 3, kind: output, shape index: {1}]  }
   0x1   :  { %v84_v0 = vld [vmem:[%s693_s0] sm:$0xff]  ;;  %v85_v1 = vld [vmem:[%s693_s0 + $0x8] sm:$0xff]  ;;  %v86_v2 = vld [vmem:[%s693_s0 + $0x10] sm:$0xff]  ;;  %82 = vst.msk [vmem:[%s694_s2] sm:$0xff] %vm81_vm0, %v552_v3 }
   0x2   :  { %v87_v4 = vld [vmem:[%s693_s0 + $0x18] sm:$0xff]  ;;  %v471_v5 = vmul.f32 -1.442695, %v84_v0  ;;  %v88_v6 = vld [vmem:[%s693_s0 + $0x20] sm:$0xff]  ;;  %v472_v7 = vmul.f32 -1.442695, %v85_v1 }
   0x3   :  { %v89_v8 = vld [vmem:[%s693_s0 + $0x28] sm:$0xff]  ;;  %v473_v9 = vmul.f32 -1.442695, %v86_v2  ;;  %v90_v10 = vld [vmem:[%s693_s0 + $0x30] sm:$0xff]  ;;  %v474_v11 = vmul.f32 -1.442695, %v87_v4 }
   0x4   :  { %488 = vpow2.f32 %v471_v5  ;;  %v91_v12 = vld [vmem:[%s693_s0 + $0x38] sm:$0xff]  ;;  %v475_v13 = vmul.f32 -1.442695, %v88_v6  ;;  %v92_v14 = vld [vmem:[%s693_s0 + $0x40] sm:$0xff]  ;;  %v476_v15 = vmul.f32 -1.442695, %v89_v8 }
   0x5   :  { %490 = vpow2.f32 %v472_v7  ;;  %v93_v16 = vld [vmem:[%s693_s0 + $0x48] sm:$0xff]  ;;  %v94_v17 = vld [vmem:[%s693_s0 + $0x50] sm:$0xff]  ;;  %v477_v18 = vmul.f32 -1.442695, %v90_v10  ;;  %v95_v19 = vld [vmem:[%s693_s0 + $0x58] sm:$0xff]  ;;  %83 = vst.msk [vmem:[%s696_s3] sm:$0xff] %vm81_vm0, %v552_v3 }
   0x6   :  { %492 = vpow2.f32 %v473_v9  ;;  %v96_v20 = vld [vmem:[%s693_s0 + $0x60] sm:$0xff]  ;;  %v478_v21 = vmul.f32 -1.442695, %v91_v12  ;;  %v97_v22 = vld [vmem:[%s693_s0 + $0x68] sm:$0xff]  ;;  %v479_v23 = vmul.f32 -1.442695, %v92_v14 }
   0x7   :  { %494 = vpow2.f32 %v474_v11  ;;  %v98_v24 = vld [vmem:[%s693_s0 + $0x70] sm:$0xff]  ;;  %v480_v25 = vmul.f32 -1.442695, %v93_v16  ;;  %v481_v26 = vmul.f32 -1.442695, %v94_v17  ;;  %v99_v27 = vld [vmem:[%s693_s0 + $0x78] sm:$0xff] }
   0x8   :  { %496 = vpow2.f32 %v475_v13  ;;  %v482_v28 = vmul.f32 -1.442695, %v95_v19  ;;  %v483_v29 = vmul.f32 -1.442695, %v96_v20  ;;  %v484_v30 = vmul.f32 -1.442695, %v97_v22 }
   0x9   :  { %498 = vpow2.f32 %v476_v15  ;;  %v485_v31 = vmul.f32 -1.442695, %v98_v24  ;;  %v486_v32 = vmul.f32 -1.442695, %v99_v27  ;;  %v100_v58 = vld [vmem:[%s695_s1] sm:$0xff]  ;;  %v101_v61 = vld [vmem:[%s695_s1 + $0x8] sm:$0xff] }
   0xa   :  { %500 = vpow2.f32 %v477_v18  ;;  %v102_v0 = vld [vmem:[%s695_s1 + $0x10] sm:$0xff]  ;;  %v103_v2 = vld [vmem:[%s695_s1 + $0x18] sm:$0xff]  ;;  %v104_v11 = vld [vmem:[%s695_s1 + $0x20] sm:$0xff] }
   0xb   :  { %502 = vpow2.f32 %v478_v21  ;;  %v105_v21 = vld [vmem:[%s695_s1 + $0x28] sm:$0xff] }
   0xc   :  { %504 = vpow2.f32 %v479_v23 }
   0xd   :  { %506 = vpow2.f32 %v480_v25 }
   0xe   :  { %508 = vpow2.f32 %v481_v26 }
   0xf   :  { %510 = vpow2.f32 %v482_v28  ;;  %v106_v28 = vld [vmem:[%s695_s1 + $0x30] sm:$0xff] }
  0x10   :  { %512 = vpow2.f32 %v483_v29 }
  0x11   :  { %v489_v33 = vpop.eup %488  ;;  %514 = vpow2.f32 %v484_v30 }
  0x12   :  { %v491_v34 = vpop.eup %490  ;;  %516 = vpow2.f32 %v485_v31  ;;  %v164_v35 = vadd.f32 1.0, %v489_v33 }
  0x13   :  { %v493_v36 = vpop.eup %492  ;;  %518 = vpow2.f32 %v486_v32  ;;  %v165_v37 = vadd.f32 1.0, %v491_v34 }
  0x14   :  { %v495_v38 = vpop.eup %494  ;;  %v166_v39 = vadd.f32 1.0, %v493_v36  ;;  %520 = vrcp.f32 %v164_v35  ;;  %v107_v35 = vld [vmem:[%s695_s1 + $0x38] sm:$0xff] }
  0x15   :  { %v497_v40 = vpop.eup %496  ;;  %v167_v41 = vadd.f32 1.0, %v495_v38  ;;  %522 = vrcp.f32 %v165_v37 }
  0x16   :  { %v499_v42 = vpop.eup %498  ;;  %v168_v43 = vadd.f32 1.0, %v497_v40  ;;  %524 = vrcp.f32 %v166_v39 }
  0x17   :  { %v501_v44 = vpop.eup %500  ;;  %v169_v45 = vadd.f32 1.0, %v499_v42  ;;  %526 = vrcp.f32 %v167_v41  ;;  %v108_v41 = vld [vmem:[%s695_s1 + $0x40] sm:$0xff] }
  0x18   :  { %v503_v46 = vpop.eup %502  ;;  %v170_v47 = vadd.f32 1.0, %v501_v44  ;;  %528 = vrcp.f32 %v168_v43 }
  0x19   :  { %v505_v48 = vpop.eup %504  ;;  %v171_v49 = vadd.f32 1.0, %v503_v46  ;;  %530 = vrcp.f32 %v169_v45 }
  0x1a   :  { %v507_v50 = vpop.eup %506  ;;  %v172_v52 = vadd.f32 1.0, %v505_v48  ;;  %532 = vrcp.f32 %v170_v47  ;;  %v109_v47 = vld [vmem:[%s695_s1 + $0x48] sm:$0xff] }
  0x1b   :  { %v509_v51 = vpop.eup %508  ;;  %v173_v55 = vadd.f32 1.0, %v507_v50  ;;  %534 = vrcp.f32 %v171_v49 }
  0x1c   :  { %v511_v53 = vpop.eup %510  ;;  %v174_v59 = vadd.f32 1.0, %v509_v51  ;;  %536 = vrcp.f32 %v172_v52 }
  0x1d   :  { %v513_v54 = vpop.eup %512  ;;  %v175_v62 = vadd.f32 1.0, %v511_v53  ;;  %538 = vrcp.f32 %v173_v55  ;;  %v110_v53 = vld [vmem:[%s695_s1 + $0x50] sm:$0xff] }
  0x1e   :  { %v515_v56 = vpop.eup %514  ;;  %v176_v4 = vadd.f32 1.0, %v513_v54  ;;  %540 = vrcp.f32 %v174_v59  ;;  %v111_v59 = vld [vmem:[%s695_s1 + $0x58] sm:$0xff] }
  0x1f   :  { %v517_v57 = vpop.eup %516  ;;  %v177_v12 = vadd.f32 1.0, %v515_v56  ;;  %542 = vrcp.f32 %v175_v62 }
  0x20   :  { %v519_v60 = vpop.eup %518  ;;  %v178_v22 = vadd.f32 1.0, %v517_v57  ;;  %544 = vrcp.f32 %v176_v4 }
  0x21   :  { %v521_v63 = vpop.eup %520  ;;  %v179_v29 = vadd.f32 1.0, %v519_v60  ;;  %546 = vrcp.f32 %v177_v12 }
  0x22   :  { %v523_v1 = vpop.eup %522  ;;  %v220_v5 = vmul.f32 %v521_v63, %v100_v58  ;;  %v257_v6 = vadd.f32 %v521_v63, %v100_v58  ;;  %548 = vrcp.f32 %v178_v22 }
  0x23   :  { %v525_v7 = vpop.eup %524  ;;  %v221_v8 = vmul.f32 %v523_v1, %v101_v61  ;;  %v258_v9 = vadd.f32 %v523_v1, %v101_v61  ;;  %550 = vrcp.f32 %v179_v29  ;;  %v112_v1 = vld [vmem:[%s695_s1 + $0x60] sm:$0xff] }
  0x24   :  { %v527_v10 = vpop.eup %526  ;;  %v222_v13 = vmul.f32 %v525_v7, %v102_v0  ;;  %v259_v14 = vadd.f32 %v525_v7, %v102_v0 }
  0x25   :  { %v529_v15 = vpop.eup %528  ;;  %v223_v16 = vmul.f32 %v527_v10, %v103_v2  ;;  %v236_v17 = vadd.f32 %v221_v8, %v220_v5  ;;  %v260_v18 = vadd.f32 %v527_v10, %v103_v2  ;;  %v273_v19 = vadd.f32 %v258_v9, %v257_v6  ;;  %v113_v8 = vld [vmem:[%s695_s1 + $0x68] sm:$0xff] }
  0x26   :  { %v531_v20 = vpop.eup %530  ;;  %v224_v23 = vmul.f32 %v529_v15, %v104_v11  ;;  %v261_v25 = vadd.f32 %v529_v15, %v104_v11 }
  0x27   :  { %v237_v24 = vadd.f32 %v236_v17, %v222_v13  ;;  %v274_v26 = vadd.f32 %v273_v19, %v259_v14  ;;  %v533_v27 = vpop.eup %532  ;;  %v225_v30 = vmul.f32 %v531_v20, %v105_v21  ;;  %v262_v32 = vadd.f32 %v531_v20, %v105_v21  ;;  %v114_v14 = vld [vmem:[%s695_s1 + $0x70] sm:$0xff]  ;;  %v115_v20 = vld [vmem:[%s695_s1 + $0x78] sm:$0xff] }
  0x28   :  { %v535_v34 = vpop.eup %534  ;;  %v226_v36 = vmul.f32 %v533_v27, %v106_v28  ;;  %v263_v38 = vadd.f32 %v533_v27, %v106_v28 }
  0x29   :  { %v238_v31 = vadd.f32 %v237_v24, %v223_v16  ;;  %v275_v33 = vadd.f32 %v274_v26, %v260_v18  ;;  %v537_v40 = vpop.eup %536  ;;  %v227_v42 = vmul.f32 %v535_v34, %v107_v35  ;;  %v264_v44 = vadd.f32 %v535_v34, %v107_v35 }
  0x2a   :  { %v539_v46 = vpop.eup %538  ;;  %v228_v48 = vmul.f32 %v537_v40, %v108_v41  ;;  %v265_v50 = vadd.f32 %v537_v40, %v108_v41 }
  0x2b   :  { %v239_v37 = vadd.f32 %v238_v31, %v224_v23  ;;  %v276_v39 = vadd.f32 %v275_v33, %v261_v25  ;;  %v541_v52 = vpop.eup %540  ;;  %v229_v55 = vmul.f32 %v539_v46, %v109_v47  ;;  %v266_v57 = vadd.f32 %v539_v46, %v109_v47  ;;  %v219_v33 = vld [vmem:[%s694_s2] sm:$0xff] }
  0x2c   :  { %v543_v54 = vpop.eup %542  ;;  %v230_v61 = vmul.f32 %v541_v52, %v110_v53  ;;  %v267_v63 = vadd.f32 %v541_v52, %v110_v53 }
  0x2d   :  { %v240_v43 = vadd.f32 %v239_v37, %v225_v30  ;;  %v277_v45 = vadd.f32 %v276_v39, %v262_v32  ;;  %v545_v60 = vpop.eup %544  ;;  %v231_v4 = vmul.f32 %v543_v54, %v111_v59  ;;  %v268_v6 = vadd.f32 %v543_v54, %v111_v59 }
  0x2e   :  { %v547_v2 = vpop.eup %546  ;;  %v232_v10 = vmul.f32 %v545_v60, %v112_v1  ;;  %v269_v12 = vadd.f32 %v545_v60, %v112_v1 }
  0x2f   :  { %v241_v49 = vadd.f32 %v240_v43, %v226_v36  ;;  %v278_v51 = vadd.f32 %v277_v45, %v263_v38  ;;  %v549_v9 = vpop.eup %548  ;;  %v233_v16 = vmul.f32 %v547_v2, %v113_v8  ;;  %v270_v18 = vadd.f32 %v547_v2, %v113_v8  ;;  %v256_v36 = vld [vmem:[%s696_s3] sm:$0xff] }
  0x30   :  { %v551_v15 = vpop.eup %550  ;;  %v234_v21 = vmul.f32 %v549_v9, %v114_v14  ;;  %v271_v23 = vadd.f32 %v549_v9, %v114_v14 }
  0x31   :  { %v242_v56 = vadd.f32 %v241_v49, %v227_v42  ;;  %v279_v58 = vadd.f32 %v278_v51, %v264_v44  ;;  %v235_v25 = vmul.f32 %v551_v15, %v115_v20  ;;  %v272_v29 = vadd.f32 %v551_v15, %v115_v20 }
  0x33   :  { %v243_v62 = vadd.f32 %v242_v56, %v228_v48  ;;  %v280_v0 = vadd.f32 %v279_v58, %v265_v50 }
  0x35   :  { %v244_v5 = vadd.f32 %v243_v62, %v229_v55  ;;  %v281_v7 = vadd.f32 %v280_v0, %v266_v57 }
  0x37   :  { %v245_v11 = vadd.f32 %v244_v5, %v230_v61  ;;  %v282_v13 = vadd.f32 %v281_v7, %v267_v63 }
  0x39   :  { %v246_v17 = vadd.f32 %v245_v11, %v231_v4  ;;  %v283_v19 = vadd.f32 %v282_v13, %v268_v6 }
  0x3b   :  { %v247_v22 = vadd.f32 %v246_v17, %v232_v10  ;;  %v284_v24 = vadd.f32 %v283_v19, %v269_v12 }
  0x3d   :  { %v248_v26 = vadd.f32 %v247_v22, %v233_v16  ;;  %v285_v27 = vadd.f32 %v284_v24, %v270_v18 }
  0x3f   :  { %v249_v28 = vadd.f32 %v248_v26, %v234_v21  ;;  %v286_v30 = vadd.f32 %v285_v27, %v271_v23 }
  0x41   :  { %v250_v31 = vadd.f32 %v249_v28, %v235_v25  ;;  %v287_v32 = vadd.f32 %v286_v30, %v272_v29 }
  0x43   :  { %251 = vadd.xlane.f32.xlu0 %v250_v31 }
  0x47   :  { %288 = vadd.xlane.f32.xlu0 %v287_v32 }
  0xcc   :  { %v252_v34 = vpop.xlane.xlu0 %251 }
  0xcd   :  { %v253_v35 = vadd.f32 %v252_v34, %v219_v33 }
  0xcf   :  { %255 = vst.msk [vmem:[%s694_s2] sm:$0xff] %vm81_vm0, %v253_v35 }
  0xd0   :  { %v289_v37 = vpop.xlane.xlu0 %288 }
  0xd1   :  { %v290_v38 = vadd.f32 %v289_v37, %v256_v36 }
  0xd3   :  { %291 = vst.msk [vmem:[%s696_s3] sm:$0xff] %vm81_vm0, %v290_v38 }

</bundles_post_ra>
